<compile_context>
chip_gen: v5e
topology: v5e:2x2
jax: 0.10.0
libtpu: 0.0.40
codegen_flags: <defaults>
</compile_context>

<pallas_src>
import functools

import jax
import jax.numpy as jnp
import numpy as np
from jax.experimental import pallas as pl
from jax.experimental.pallas import tpu as pltpu

LN_EPS = 1e-5          # PyTorch nn.LayerNorm default
_MASK_VALUE = -1e30    # finite "-inf" for masked key positions


def _layer_norm_cols(z, gamma, beta):
    """LayerNorm over the embedding axis (axis 0) of an (E, T) tile, f32 math."""
    mu = jnp.mean(z, axis=0, keepdims=True)
    var = jnp.mean(jnp.square(z - mu), axis=0, keepdims=True)
    return (z - mu) * jax.lax.rsqrt(var + LN_EPS) * gamma + beta


def _attention_block_kernel(
    x_q_ref,                 # (E, TQ)    f32   query tile (also residual input)
    k_ref,                   # (H, TK, D) bf16  key tile   (tokens on sublanes)
    v_ref,                   # (H, D, TK) bf16  value tile (tokens on lanes)
    wq_ref, wo_ref, wl_ref,  # (E, E)     bf16  (wq pre-scaled by 1/sqrt(D))
    pv_ref,                  # (E, 8)     f32   packed [bq*s, bo, bl, g1, b1, g2, b2, 0]
    o_ref,                   # (E, TQ)    f32
    q_scr,                   # (H, D, TQ) bf16  cached Q heads
    m_scr, l_scr,            # (H, 1, TQ) f32   online-softmax running max / sum
    acc_scr,                 # (H, D, TQ) f32   output accumulator
    *, num_heads, seq_len, block_k):
    kj = pl.program_id(2)
    nk = pl.num_programs(2)
    E, TQ = x_q_ref.shape
    H = num_heads
    D = E // H

    # ---- per (b, qi) init: Q projection + online-softmax state ------------
    @pl.when(kj == 0)
    def _():
        x_bf = x_q_ref[...].astype(jnp.bfloat16)
        q = jnp.dot(wq_ref[...], x_bf,
                    preferred_element_type=jnp.float32) + pv_ref[:, 0:1]
        q_scr[...] = q.reshape(H, D, TQ).astype(jnp.bfloat16)
        m_scr[...] = jnp.full_like(m_scr, -jnp.inf)
        l_scr[...] = jnp.zeros_like(l_scr)
        acc_scr[...] = jnp.zeros_like(acc_scr)

    # ---- one K/V tile of flash attention, all heads at once ---------------
    # MXU-native: contract K's lane axis (D) against Q's sublane axis (D).
    s = jnp.einsum("hkd,hdq->hkq", k_ref[...], q_scr[...],
                   preferred_element_type=jnp.float32)            # (H, TK, TQ)
    if seq_len % block_k != 0:
        kpos = kj * block_k + jax.lax.broadcasted_iota(jnp.int32, s.shape, 1)
        s = jnp.where(kpos < seq_len, s, _MASK_VALUE)

    m_prev = m_scr[...]
    m_new = jnp.maximum(m_prev, jnp.max(s, axis=1, keepdims=True))  # (H, 1, TQ)
    alpha = jnp.exp(m_prev - m_new)
    p = jnp.exp(s - m_new)                                          # (H, TK, TQ)
    l_scr[...] = alpha * l_scr[...] + jnp.sum(p, axis=1, keepdims=True)
    # MXU-native: contract V's lane axis (TK) against P's sublane axis (TK).
    acc_scr[...] = alpha * acc_scr[...] + jnp.einsum(
        "hdk,hkq->hdq", v_ref[...], p.astype(jnp.bfloat16),
        preferred_element_type=jnp.float32)                         # (H, D, TQ)
    m_scr[...] = m_new

    # ---- finalize: out-proj, residual+LN1, linear, residual+LN2 ------------
    @pl.when(kj == nk - 1)
    def _():
        ctx = acc_scr[...] * pl.reciprocal(l_scr[...], approx=True)
        ctx = ctx.reshape(E, TQ)
        attn = jnp.dot(wo_ref[...], ctx.astype(jnp.bfloat16),
                       preferred_element_type=jnp.float32) + pv_ref[:, 1:2]
        y = _layer_norm_cols(x_q_ref[...] + attn, pv_ref[:, 3:4], pv_ref[:, 4:5])
        lin = jnp.dot(wl_ref[...], y.astype(jnp.bfloat16),
                      preferred_element_type=jnp.float32) + pv_ref[:, 2:3]
        z = _layer_norm_cols(y + lin, pv_ref[:, 5:6], pv_ref[:, 6:7])
        o_ref[...] = z.astype(o_ref.dtype)


def _vmem_capacity_bytes():
    try:
        cap = getattr(pltpu.get_tpu_info(), "vmem_capacity_bytes", None)
        if cap:
            return int(cap)
    except Exception:
        pass
    try:
        kind = jax.devices()[0].device_kind.lower()
    except Exception:
        kind = ""
    return (64 if "v7" in kind else 128) * 1024 * 1024


def self_attention_forward(x_bel, params, num_heads, *, tq=None, tk=None):
    """x_bel: (B, E, L) float32, matching the PyTorch module's input layout."""
    B, E, L = x_bel.shape
    assert E % num_heads == 0, "embed_dim must be divisible by num_heads"
    H = num_heads
    D = E // H

    # --- per-generation tile / VMEM budget (review: v7x has 64 MiB VMEM) ---
    vmem_cap = _vmem_capacity_bytes()
    vmem_limit = int((vmem_cap * 3) // 4)
    tq_max = 512 if vmem_cap >= (100 << 20) else 256
    tk_max = 512
    if tq is None:
        tq = L if L <= tq_max else tq_max
    if tk is None:
        tk = L if L <= tk_max else tk_max
    tq = min(tq, L)
    tk = min(tk, L)
    assert tq == L or tq % 128 == 0, "query tile must be 128-aligned or full"
    assert tk == L or tk % 128 == 0, "key tile must be 128-aligned or full"
    nq = pl.cdiv(L, tq)
    nk = pl.cdiv(L, tk)
    l_pad = nk * tk

    wqkv = params["wqkv"]            # (3E, E) -- PyTorch in_proj_weight layout
    bqkv = params["bqkv"]            # (3E,)
    scale = 1.0 / np.sqrt(D)

    # Fold the softmax scale into the Q projection (grid-invariant work).
    wq = (wqkv[0:E] * scale).astype(jnp.bfloat16)
    wo = params["wo"].astype(jnp.bfloat16)
    wl = params["wl"].astype(jnp.bfloat16)
    # Pack the seven per-channel vectors into one lane-padded (E, 8) block.
    pvec = jnp.stack(
        [bqkv[0:E] * scale, params["bo"], params["bl"],
         params["g1"], params["b1"], params["g2"], params["b2"],
         jnp.zeros((E,), jnp.float32)], axis=1).astype(jnp.float32)

    # --- K/V in-projection hoisted out of the kernel (plain XLA, bf16 out) --
    #   K layout (B, H, L, D): tokens on sublanes, head-dim on lanes.
    #   V layout (B, H, D, L): head-dim on sublanes, tokens on lanes.
    # Both layouts make the in-kernel attention matmuls MXU-native.
    wk = wqkv[E:2 * E].astype(jnp.bfloat16)
    wv = wqkv[2 * E:3 * E].astype(jnp.bfloat16)
    bk = bqkv[E:2 * E]
    bv = bqkv[2 * E:3 * E]
    x_bf = x_bel.astype(jnp.bfloat16)
    k = jnp.einsum("ef,bfl->bel", wk, x_bf,
                   preferred_element_type=jnp.float32) + bk[None, :, None]
    v = jnp.einsum("ef,bfl->bel", wv, x_bf,
                   preferred_element_type=jnp.float32) + bv[None, :, None]
    k_hld = jnp.swapaxes(k.reshape(B, H, D, L), 2, 3).astype(jnp.bfloat16)
    v_hdl = v.reshape(B, H, D, L).astype(jnp.bfloat16)
    if l_pad != L:
        # Zero-pad the key axis so padded K/V tiles are well-defined
        # (scores for padded keys are additionally masked in the kernel).
        k_hld = jnp.pad(k_hld, ((0, 0), (0, 0), (0, l_pad - L), (0, 0)))
        v_hdl = jnp.pad(v_hdl, ((0, 0), (0, 0), (0, 0), (0, l_pad - L)))

    kernel = functools.partial(_attention_block_kernel,
                               num_heads=H, seq_len=L, block_k=tk)

    def invariant(shape):
        # Grid-invariant operand: fetched once, single-buffered (VMEM saver).
        return pl.BlockSpec(shape, lambda b, qi, kj: (0,) * len(shape),
                            pipeline_mode=pl.Buffered(1))

    grid_spec = pltpu.PrefetchScalarGridSpec(
        num_scalar_prefetch=0,
        grid=(B, nq, nk),
        in_specs=[
            # query tile of x (also the residual input)
            pl.BlockSpec((pl.Squeezed(), E, tq), lambda b, qi, kj: (b, 0, qi)),
            # K tile (B, H, L_pad, D) and V tile (B, H, D, L_pad), bf16
            pl.BlockSpec((pl.Squeezed(), H, tk, D), lambda b, qi, kj: (b, 0, kj, 0)),
            pl.BlockSpec((pl.Squeezed(), H, D, tk), lambda b, qi, kj: (b, 0, 0, kj)),
            invariant((E, E)), invariant((E, E)), invariant((E, E)),   # wq wo wl
            invariant((E, 8)),                                         # packed params
        ],
        out_specs=pl.BlockSpec((pl.Squeezed(), E, tq), lambda b, qi, kj: (b, 0, qi)),
        scratch_shapes=[
            pltpu.VMEM((H, D, tq), jnp.bfloat16),   # cached Q heads
            pltpu.VMEM((H, 1, tq), jnp.float32),    # running max
            pltpu.VMEM((H, 1, tq), jnp.float32),    # running sum
            pltpu.VMEM((H, D, tq), jnp.float32),    # output accumulator
        ],
    )

    flops = int(B * (6 * L * E * E + 4 * L * L * E))
    transcendentals = int(B * H * L * l_pad + 4 * B * L)
    bytes_accessed = int(2 * B * E * L * 4 + nq * B * E * l_pad * 2 * 2
                         + 3 * E * E * 2 + E * 8 * 4)

    out = pl.pallas_call(
        kernel,
        out_shape=jax.ShapeDtypeStruct((B, E, L), jnp.float32),
        grid_spec=grid_spec,
        compiler_params=pltpu.CompilerParams(
            dimension_semantics=("parallel", "parallel", "arbitrary"),
            vmem_limit_bytes=vmem_limit),
        cost_estimate=pl.CostEstimate(flops=flops,
                                      transcendentals=transcendentals,
                                      bytes_accessed=bytes_accessed),
    )(x_bel, k_hld, v_hdl, wq, wo, wl, pvec)

    return out  # (B, E, L), same layout as the PyTorch module's output


def init_params(embed_dim, key):
    ks = jax.random.split(key, 6)
    s = 0.05
    return {
        "wqkv": (jax.random.normal(ks[0], (3 * embed_dim, embed_dim)) * s).astype(jnp.float32),
        "bqkv": (jax.random.normal(ks[1], (3 * embed_dim,)) * s).astype(jnp.float32),
        "wo":   (jax.random.normal(ks[2], (embed_dim, embed_dim)) * s).astype(jnp.float32),
        "bo":   (jax.random.normal(ks[3], (embed_dim,)) * s).astype(jnp.float32),
        "wl":   (jax.random.normal(ks[4], (embed_dim, embed_dim)) * s).astype(jnp.float32),
        "bl":   (jax.random.normal(ks[5], (embed_dim,)) * s).astype(jnp.float32),
        "g1": jnp.ones((embed_dim,), jnp.float32),
        "b1": jnp.zeros((embed_dim,), jnp.float32),
        "g2": jnp.ones((embed_dim,), jnp.float32),
        "b2": jnp.zeros((embed_dim,), jnp.float32),
    }


def reference_forward(x_bel, params, num_heads):
    """Pure-JAX f32 reference mirroring PyTorch semantics."""
    B, E, L = x_bel.shape
    D = E // num_heads
    x = jnp.transpose(x_bel, (0, 2, 1))              # (B, L, E)
    qkv = jnp.einsum("ble,fe->blf", x, params["wqkv"]) + params["bqkv"]
    q, k, v = qkv[..., :E], qkv[..., E:2 * E], qkv[..., 2 * E:]
    qh = q.reshape(B, L, num_heads, D)
    kh = k.reshape(B, L, num_heads, D)
    vh = v.reshape(B, L, num_heads, D)
    s = jnp.einsum("bqhd,bkhd->bhqk", qh, kh) / jnp.sqrt(jnp.float32(D))
    p = jax.nn.softmax(s, axis=-1)
    attn = jnp.einsum("bhqk,bkhd->bqhd", p, vh).reshape(B, L, E)
    attn = jnp.einsum("ble,fe->blf", attn, params["wo"]) + params["bo"]

    def ln(z, g, b):
        mu = jnp.mean(z, axis=-1, keepdims=True)
        var = jnp.mean((z - mu) ** 2, axis=-1, keepdims=True)
        return (z - mu) * jax.lax.rsqrt(var + LN_EPS) * g + b

    y = ln(x + attn, params["g1"], params["b1"])
    lin = jnp.einsum("ble,fe->blf", y, params["wl"]) + params["bl"]
    z = ln(y + lin, params["g2"], params["b2"])
    return jnp.transpose(z, (0, 2, 1))


if __name__ == "__main__":
    key = jax.random.PRNGKey(0)

    def run_case(B, E, L, H, tq=None, tk=None, case_id=0):
        kx, kp = jax.random.split(jax.random.fold_in(key, case_id))
        x = jax.random.normal(kx, (B, E, L), jnp.float32)
        params = init_params(E, kp)
        out = jax.block_until_ready(
            self_attention_forward(x, params, H, tq=tq, tk=tk))
        ref = reference_forward(x, params, H)
        # bf16 MXU inputs (f32 accumulation) + approx reciprocal -> loose tol.
        np.testing.assert_allclose(np.asarray(out), np.asarray(ref),
                                   rtol=2e-2, atol=2e-2)

    # Small shapes implied by the module: (batch=2, embed_dim=32, seq=8), 4 heads.
    run_case(B=2, E=32, L=8, H=4, case_id=0)
    # Multi-tile flash path: NQ=3, NK=3 with ragged final query/key tiles.
    run_case(B=1, E=32, L=320, H=4, tq=128, tk=128, case_id=1)
    print("KERNEL_OK")
</pallas_src>

<mosaic_0001>
module attributes {stable_mosaic.version = 11 : i64} {
  func.func @_attention_block_kernel(%arg0: i32, %arg1: i32, %arg2: i32, %arg3: memref<1x32x8xf32, #tpu.memory_space<vmem>>, %arg4: memref<1x4x8x8xbf16, #tpu.memory_space<vmem>>, %arg5: memref<1x4x8x8xbf16, #tpu.memory_space<vmem>>, %arg6: memref<32x32xbf16, #tpu.memory_space<vmem>>, %arg7: memref<32x32xbf16, #tpu.memory_space<vmem>>, %arg8: memref<32x32xbf16, #tpu.memory_space<vmem>>, %arg9: memref<32x8xf32, #tpu.memory_space<vmem>>, %arg10: memref<1x32x8xf32, #tpu.memory_space<vmem>>, %arg11: memref<4x8x8xbf16, #tpu.memory_space<vmem>>, %arg12: memref<4x1x8xf32, #tpu.memory_space<vmem>>, %arg13: memref<4x1x8xf32, #tpu.memory_space<vmem>>, %arg14: memref<4x8x8xf32, #tpu.memory_space<vmem>>) attributes {dimension_semantics = [#tpu.dimension_semantics<parallel>, #tpu.dimension_semantics<parallel>, #tpu.dimension_semantics<arbitrary>], iteration_bounds = array<i64: 2, 1, 1>, scalar_prefetch = 0 : i64, scratch_operands = 4 : i64, tpu.core_type = #tpu.core_type<tc>, window_params = [{transform_indices = @transform_0, window_bounds = array<i64: 1, 32, 8>}, {transform_indices = @transform_1, window_bounds = array<i64: 1, 4, 8, 8>}, {transform_indices = @transform_2, window_bounds = array<i64: 1, 4, 8, 8>}, {pipeline_mode = #tpu.pipeline_mode<synchronous>, transform_indices = @transform_3, window_bounds = array<i64: 32, 32>}, {pipeline_mode = #tpu.pipeline_mode<synchronous>, transform_indices = @transform_4, window_bounds = array<i64: 32, 32>}, {pipeline_mode = #tpu.pipeline_mode<synchronous>, transform_indices = @transform_5, window_bounds = array<i64: 32, 32>}, {pipeline_mode = #tpu.pipeline_mode<synchronous>, transform_indices = @transform_6, window_bounds = array<i64: 32, 8>}, {transform_indices = @transform_7, window_bounds = array<i64: 1, 32, 8>}]} {
    %c0_i32 = arith.constant 0 : i32
    %0 = arith.cmpi eq, %arg2, %c0_i32 : i32
    %1 = arith.extui %0 : i1 to i32
    %c0_i32_0 = arith.constant 0 : i32
    %2 = arith.cmpi ne, %1, %c0_i32_0 : i32
    scf.if %2 {
      %c0_34 = arith.constant 0 : index
      %c0_35 = arith.constant 0 : index
      %c0_36 = arith.constant 0 : index
      %35 = vector.load %arg3[%c0_34, %c0_35, %c0_36] : memref<1x32x8xf32, #tpu.memory_space<vmem>>, vector<1x32x8xf32>
      %36 = vector.shape_cast %35 : vector<1x32x8xf32> to vector<32x8xf32>
      %37 = arith.truncf %36 : vector<32x8xf32> to vector<32x8xbf16>
      %c0_37 = arith.constant 0 : index
      %c0_38 = arith.constant 0 : index
      %38 = vector.load %arg6[%c0_37, %c0_38] : memref<32x32xbf16, #tpu.memory_space<vmem>>, vector<32x32xbf16>
      %cst_39 = arith.constant dense<0.000000e+00> : vector<32x8xf32>
      %39 = tpu.matmul %38, %37, %cst_39 {dimension_numbers = #tpu.dot_dimension_numbers<[1], [0], [0], [1], [0, 0, 1, 1], [], []>} : vector<32x32xbf16>, vector<32x8xbf16>, vector<32x8xf32> -> vector<32x8xf32>
      %c0_40 = arith.constant 0 : index
      %c0_41 = arith.constant 0 : index
      %40 = vector.load %arg9[%c0_40, %c0_41] : memref<32x8xf32, #tpu.memory_space<vmem>>, vector<32x1xf32>
      %41 = vector.broadcast %40 : vector<32x1xf32> to vector<32x8xf32>
      %42 = arith.addf %39, %41 : vector<32x8xf32>
      %43 = vector.shape_cast %42 : vector<32x8xf32> to vector<4x8x8xf32>
      %44 = arith.truncf %43 : vector<4x8x8xf32> to vector<4x8x8xbf16>
      %c0_42 = arith.constant 0 : index
      %c0_43 = arith.constant 0 : index
      %c0_44 = arith.constant 0 : index
      %45 = vector.load %arg11[%c0_42, %c0_43, %c0_44] : memref<4x8x8xbf16, #tpu.memory_space<vmem>>, vector<4x8x8xbf16>
      tpu.vector_store %arg11[%c0_42, %c0_43, %c0_44], %44 {strides = array<i32>} : memref<4x8x8xbf16, #tpu.memory_space<vmem>>, vector<4x8x8xbf16>,
      %cst_45 = arith.constant 0xFF800000 : f32
      %46 = vector.broadcast %cst_45 : f32 to vector<4x1x8xf32>
      %c0_46 = arith.constant 0 : index
      %c0_47 = arith.constant 0 : index
      %c0_48 = arith.constant 0 : index
      %47 = vector.load %arg12[%c0_46, %c0_47, %c0_48] : memref<4x1x8xf32, #tpu.memory_space<vmem>>, vector<4x1x8xf32>
      tpu.vector_store %arg12[%c0_46, %c0_47, %c0_48], %46 {strides = array<i32>} : memref<4x1x8xf32, #tpu.memory_space<vmem>>, vector<4x1x8xf32>,
      %cst_49 = arith.constant 0.000000e+00 : f32
      %48 = vector.broadcast %cst_49 : f32 to vector<4x1x8xf32>
      %c0_50 = arith.constant 0 : index
      %c0_51 = arith.constant 0 : index
      %c0_52 = arith.constant 0 : index
      %49 = vector.load %arg13[%c0_50, %c0_51, %c0_52] : memref<4x1x8xf32, #tpu.memory_space<vmem>>, vector<4x1x8xf32>
      tpu.vector_store %arg13[%c0_50, %c0_51, %c0_52], %48 {strides = array<i32>} : memref<4x1x8xf32, #tpu.memory_space<vmem>>, vector<4x1x8xf32>,
      %cst_53 = arith.constant 0.000000e+00 : f32
      %50 = vector.broadcast %cst_53 : f32 to vector<4x8x8xf32>
      %c0_54 = arith.constant 0 : index
      %c0_55 = arith.constant 0 : index
      %c0_56 = arith.constant 0 : index
      %51 = vector.load %arg14[%c0_54, %c0_55, %c0_56] : memref<4x8x8xf32, #tpu.memory_space<vmem>>, vector<4x8x8xf32>
      tpu.vector_store %arg14[%c0_54, %c0_55, %c0_56], %50 {strides = array<i32>} : memref<4x8x8xf32, #tpu.memory_space<vmem>>, vector<4x8x8xf32>,
    } else {
    }
    %c0 = arith.constant 0 : index
    %c0_1 = arith.constant 0 : index
    %c0_2 = arith.constant 0 : index
    %c0_3 = arith.constant 0 : index
    %3 = vector.load %arg4[%c0, %c0_1, %c0_2, %c0_3] : memref<1x4x8x8xbf16, #tpu.memory_space<vmem>>, vector<1x4x8x8xbf16>
    %4 = vector.shape_cast %3 : vector<1x4x8x8xbf16> to vector<4x8x8xbf16>
    %c0_4 = arith.constant 0 : index
    %c0_5 = arith.constant 0 : index
    %c0_6 = arith.constant 0 : index
    %5 = vector.load %arg11[%c0_4, %c0_5, %c0_6] : memref<4x8x8xbf16, #tpu.memory_space<vmem>>, vector<4x8x8xbf16>
    "tpu.trace_start"() <{level = 10 : i32, message = "hkd,hdq->hkq"}> : () -> ()
    %cst = arith.constant dense<0.000000e+00> : vector<4x8x8xf32>
    %6 = tpu.matmul %4, %5, %cst {dimension_numbers = #tpu.dot_dimension_numbers<[2], [1], [1], [2], [0, 0, 0, 1, 1, 2], [0], [0]>} : vector<4x8x8xbf16>, vector<4x8x8xbf16>, vector<4x8x8xf32> -> vector<4x8x8xf32>
    "tpu.trace_stop"() : () -> ()
    %c0_7 = arith.constant 0 : index
    %c0_8 = arith.constant 0 : index
    %c0_9 = arith.constant 0 : index
    %7 = vector.load %arg12[%c0_7, %c0_8, %c0_9] : memref<4x1x8xf32, #tpu.memory_space<vmem>>, vector<4x1x8xf32>
    %cst_10 = arith.constant dense<0xFF800000> : vector<4x8xf32>
    %8 = vector.multi_reduction <maximumf>, %6, %cst_10 [1] : vector<4x8x8xf32> to vector<4x8xf32>
    %9 = vector.shape_cast %8 : vector<4x8xf32> to vector<4x1x8xf32>
    %10 = arith.maximumf %7, %9 : vector<4x1x8xf32>
    %11 = arith.subf %7, %10 : vector<4x1x8xf32>
    %12 = math.exp %11 : vector<4x1x8xf32>
    %13 = vector.broadcast %10 : vector<4x1x8xf32> to vector<4x8x8xf32>
    %14 = arith.subf %6, %13 : vector<4x8x8xf32>
    %15 = math.exp %14 : vector<4x8x8xf32>
    %c0_11 = arith.constant 0 : index
    %c0_12 = arith.constant 0 : index
    %c0_13 = arith.constant 0 : index
    %16 = vector.load %arg13[%c0_11, %c0_12, %c0_13] : memref<4x1x8xf32, #tpu.memory_space<vmem>>, vector<4x1x8xf32>
    %17 = arith.mulf %12, %16 : vector<4x1x8xf32>
    %cst_14 = arith.constant dense<0.000000e+00> : vector<4x8xf32>
    %18 = vector.multi_reduction <add>, %15, %cst_14 [1] : vector<4x8x8xf32> to vector<4x8xf32>
    %19 = vector.shape_cast %18 : vector<4x8xf32> to vector<4x1x8xf32>
    %20 = arith.addf %17, %19 : vector<4x1x8xf32>
    %c0_15 = arith.constant 0 : index
    %c0_16 = arith.constant 0 : index
    %c0_17 = arith.constant 0 : index
    %21 = vector.load %arg13[%c0_15, %c0_16, %c0_17] : memref<4x1x8xf32, #tpu.memory_space<vmem>>, vector<4x1x8xf32>
    tpu.vector_store %arg13[%c0_15, %c0_16, %c0_17], %20 {strides = array<i32>} : memref<4x1x8xf32, #tpu.memory_space<vmem>>, vector<4x1x8xf32>,
    %c0_18 = arith.constant 0 : index
    %c0_19 = arith.constant 0 : index
    %c0_20 = arith.constant 0 : index
    %22 = vector.load %arg14[%c0_18, %c0_19, %c0_20] : memref<4x8x8xf32, #tpu.memory_space<vmem>>, vector<4x8x8xf32>
    %23 = vector.broadcast %12 : vector<4x1x8xf32> to vector<4x8x8xf32>
    %24 = arith.mulf %23, %22 : vector<4x8x8xf32>
    %c0_21 = arith.constant 0 : index
    %c0_22 = arith.constant 0 : index
    %c0_23 = arith.constant 0 : index
    %c0_24 = arith.constant 0 : index
    %25 = vector.load %arg5[%c0_21, %c0_22, %c0_23, %c0_24] : memref<1x4x8x8xbf16, #tpu.memory_space<vmem>>, vector<1x4x8x8xbf16>
    %26 = vector.shape_cast %25 : vector<1x4x8x8xbf16> to vector<4x8x8xbf16>
    %27 = arith.truncf %15 : vector<4x8x8xf32> to vector<4x8x8xbf16>
    "tpu.trace_start"() <{level = 10 : i32, message = "hdk,hkq->hdq"}> : () -> ()
    %cst_25 = arith.constant dense<0.000000e+00> : vector<4x8x8xf32>
    %28 = tpu.matmul %26, %27, %cst_25 {dimension_numbers = #tpu.dot_dimension_numbers<[2], [1], [1], [2], [0, 0, 0, 1, 1, 2], [0], [0]>} : vector<4x8x8xbf16>, vector<4x8x8xbf16>, vector<4x8x8xf32> -> vector<4x8x8xf32>
    "tpu.trace_stop"() : () -> ()
    %29 = arith.addf %24, %28 : vector<4x8x8xf32>
    %c0_26 = arith.constant 0 : index
    %c0_27 = arith.constant 0 : index
    %c0_28 = arith.constant 0 : index
    %30 = vector.load %arg14[%c0_26, %c0_27, %c0_28] : memref<4x8x8xf32, #tpu.memory_space<vmem>>, vector<4x8x8xf32>
    tpu.vector_store %arg14[%c0_26, %c0_27, %c0_28], %29 {strides = array<i32>} : memref<4x8x8xf32, #tpu.memory_space<vmem>>, vector<4x8x8xf32>,
    %c0_29 = arith.constant 0 : index
    %c0_30 = arith.constant 0 : index
    %c0_31 = arith.constant 0 : index
    %31 = vector.load %arg12[%c0_29, %c0_30, %c0_31] : memref<4x1x8xf32, #tpu.memory_space<vmem>>, vector<4x1x8xf32>
    tpu.vector_store %arg12[%c0_29, %c0_30, %c0_31], %10 {strides = array<i32>} : memref<4x1x8xf32, #tpu.memory_space<vmem>>, vector<4x1x8xf32>,
    %c0_i32_32 = arith.constant 0 : i32
    %32 = arith.cmpi eq, %arg2, %c0_i32_32 : i32
    %33 = arith.extui %32 : i1 to i32
    %c0_i32_33 = arith.constant 0 : i32
    %34 = arith.cmpi ne, %33, %c0_i32_33 : i32
    scf.if %34 {
      %c0_34 = arith.constant 0 : index
      %c0_35 = arith.constant 0 : index
      %c0_36 = arith.constant 0 : index
      %35 = vector.load %arg14[%c0_34, %c0_35, %c0_36] : memref<4x8x8xf32, #tpu.memory_space<vmem>>, vector<4x8x8xf32>
      %c0_37 = arith.constant 0 : index
      %c0_38 = arith.constant 0 : index
      %c0_39 = arith.constant 0 : index
      %36 = vector.load %arg13[%c0_37, %c0_38, %c0_39] : memref<4x1x8xf32, #tpu.memory_space<vmem>>, vector<4x1x8xf32>
      %37 = tpu.reciprocal %36 {approx = true} : vector<4x1x8xf32> -> vector<4x1x8xf32>
      %38 = vector.broadcast %37 : vector<4x1x8xf32> to vector<4x8x8xf32>
      %39 = arith.mulf %35, %38 : vector<4x8x8xf32>
      %40 = vector.shape_cast %39 : vector<4x8x8xf32> to vector<32x8xf32>
      %c0_40 = arith.constant 0 : index
      %c0_41 = arith.constant 0 : index
      %41 = vector.load %arg7[%c0_40, %c0_41] : memref<32x32xbf16, #tpu.memory_space<vmem>>, vector<32x32xbf16>
      %42 = arith.truncf %40 : vector<32x8xf32> to vector<32x8xbf16>
      %cst_42 = arith.constant dense<0.000000e+00> : vector<32x8xf32>
      %43 = tpu.matmul %41, %42, %cst_42 {dimension_numbers = #tpu.dot_dimension_numbers<[1], [0], [0], [1], [0, 0, 1, 1], [], []>} : vector<32x32xbf16>, vector<32x8xbf16>, vector<32x8xf32> -> vector<32x8xf32>
      %c0_43 = arith.constant 0 : index
      %c1 = arith.constant 1 : index
      %44 = vector.load %arg9[%c0_43, %c1] : memref<32x8xf32, #tpu.memory_space<vmem>>, vector<32x1xf32>
      %45 = vector.broadcast %44 : vector<32x1xf32> to vector<32x8xf32>
      %46 = arith.addf %43, %45 : vector<32x8xf32>
      %c0_44 = arith.constant 0 : index
      %c0_45 = arith.constant 0 : index
      %c0_46 = arith.constant 0 : index
      %47 = vector.load %arg3[%c0_44, %c0_45, %c0_46] : memref<1x32x8xf32, #tpu.memory_space<vmem>>, vector<1x32x8xf32>
      %48 = vector.shape_cast %47 : vector<1x32x8xf32> to vector<32x8xf32>
      %49 = arith.addf %48, %46 : vector<32x8xf32>
      %c0_47 = arith.constant 0 : index
      %c3 = arith.constant 3 : index
      %50 = vector.load %arg9[%c0_47, %c3] : memref<32x8xf32, #tpu.memory_space<vmem>>, vector<32x1xf32>
      %c0_48 = arith.constant 0 : index
      %c4 = arith.constant 4 : index
      %51 = vector.load %arg9[%c0_48, %c4] : memref<32x8xf32, #tpu.memory_space<vmem>>, vector<32x1xf32>
      %cst_49 = arith.constant dense<0.000000e+00> : vector<8xf32>
      %52 = vector.multi_reduction <add>, %49, %cst_49 [0] : vector<32x8xf32> to vector<8xf32>
      %53 = vector.shape_cast %52 : vector<8xf32> to vector<1x8xf32>
      %cst_50 = arith.constant 3.200000e+01 : f32
      %54 = vector.broadcast %cst_50 : f32 to vector<1x8xf32>
      %55 = arith.divf %53, %54 : vector<1x8xf32>
      %56 = vector.broadcast %55 : vector<1x8xf32> to vector<32x8xf32>
      %57 = arith.subf %49, %56 : vector<32x8xf32>
      %58 = arith.mulf %57, %57 : vector<32x8xf32>
      %cst_51 = arith.constant dense<0.000000e+00> : vector<8xf32>
      %59 = vector.multi_reduction <add>, %58, %cst_51 [0] : vector<32x8xf32> to vector<8xf32>
      %60 = vector.shape_cast %59 : vector<8xf32> to vector<1x8xf32>
      %cst_52 = arith.constant 3.200000e+01 : f32
      %61 = vector.broadcast %cst_52 : f32 to vector<1x8xf32>
      %62 = arith.divf %60, %61 : vector<1x8xf32>
      %63 = vector.broadcast %55 : vector<1x8xf32> to vector<32x8xf32>
      %64 = arith.subf %49, %63 : vector<32x8xf32>
      %cst_53 = arith.constant 9.99999974E-6 : f32
      %65 = vector.broadcast %cst_53 : f32 to vector<1x8xf32>
      %66 = arith.addf %62, %65 : vector<1x8xf32>
      %67 = math.rsqrt %66 : vector<1x8xf32>
      %68 = vector.broadcast %67 : vector<1x8xf32> to vector<32x8xf32>
      %69 = arith.mulf %64, %68 : vector<32x8xf32>
      %70 = vector.broadcast %50 : vector<32x1xf32> to vector<32x8xf32>
      %71 = arith.mulf %69, %70 : vector<32x8xf32>
      %72 = vector.broadcast %51 : vector<32x1xf32> to vector<32x8xf32>
      %73 = arith.addf %71, %72 : vector<32x8xf32>
      %c0_54 = arith.constant 0 : index
      %c0_55 = arith.constant 0 : index
      %74 = vector.load %arg8[%c0_54, %c0_55] : memref<32x32xbf16, #tpu.memory_space<vmem>>, vector<32x32xbf16>
      %75 = arith.truncf %73 : vector<32x8xf32> to vector<32x8xbf16>
      %cst_56 = arith.constant dense<0.000000e+00> : vector<32x8xf32>
      %76 = tpu.matmul %74, %75, %cst_56 {dimension_numbers = #tpu.dot_dimension_numbers<[1], [0], [0], [1], [0, 0, 1, 1], [], []>} : vector<32x32xbf16>, vector<32x8xbf16>, vector<32x8xf32> -> vector<32x8xf32>
      %c0_57 = arith.constant 0 : index
      %c2 = arith.constant 2 : index
      %77 = vector.load %arg9[%c0_57, %c2] : memref<32x8xf32, #tpu.memory_space<vmem>>, vector<32x1xf32>
      %78 = vector.broadcast %77 : vector<32x1xf32> to vector<32x8xf32>
      %79 = arith.addf %76, %78 : vector<32x8xf32>
      %80 = arith.addf %73, %79 : vector<32x8xf32>
      %c0_58 = arith.constant 0 : index
      %c5 = arith.constant 5 : index
      %81 = vector.load %arg9[%c0_58, %c5] : memref<32x8xf32, #tpu.memory_space<vmem>>, vector<32x1xf32>
      %c0_59 = arith.constant 0 : index
      %c6 = arith.constant 6 : index
      %82 = vector.load %arg9[%c0_59, %c6] : memref<32x8xf32, #tpu.memory_space<vmem>>, vector<32x1xf32>
      %cst_60 = arith.constant dense<0.000000e+00> : vector<8xf32>
      %83 = vector.multi_reduction <add>, %80, %cst_60 [0] : vector<32x8xf32> to vector<8xf32>
      %84 = vector.shape_cast %83 : vector<8xf32> to vector<1x8xf32>
      %cst_61 = arith.constant 3.200000e+01 : f32
      %85 = vector.broadcast %cst_61 : f32 to vector<1x8xf32>
      %86 = arith.divf %84, %85 : vector<1x8xf32>
      %87 = vector.broadcast %86 : vector<1x8xf32> to vector<32x8xf32>
      %88 = arith.subf %80, %87 : vector<32x8xf32>
      %89 = arith.mulf %88, %88 : vector<32x8xf32>
      %cst_62 = arith.constant dense<0.000000e+00> : vector<8xf32>
      %90 = vector.multi_reduction <add>, %89, %cst_62 [0] : vector<32x8xf32> to vector<8xf32>
      %91 = vector.shape_cast %90 : vector<8xf32> to vector<1x8xf32>
      %cst_63 = arith.constant 3.200000e+01 : f32
      %92 = vector.broadcast %cst_63 : f32 to vector<1x8xf32>
      %93 = arith.divf %91, %92 : vector<1x8xf32>
      %94 = vector.broadcast %86 : vector<1x8xf32> to vector<32x8xf32>
      %95 = arith.subf %80, %94 : vector<32x8xf32>
      %cst_64 = arith.constant 9.99999974E-6 : f32
      %96 = vector.broadcast %cst_64 : f32 to vector<1x8xf32>
      %97 = arith.addf %93, %96 : vector<1x8xf32>
      %98 = math.rsqrt %97 : vector<1x8xf32>
      %99 = vector.broadcast %98 : vector<1x8xf32> to vector<32x8xf32>
      %100 = arith.mulf %95, %99 : vector<32x8xf32>
      %101 = vector.broadcast %81 : vector<32x1xf32> to vector<32x8xf32>
      %102 = arith.mulf %100, %101 : vector<32x8xf32>
      %103 = vector.broadcast %82 : vector<32x1xf32> to vector<32x8xf32>
      %104 = arith.addf %102, %103 : vector<32x8xf32>
      %c0_65 = arith.constant 0 : index
      %c0_66 = arith.constant 0 : index
      %c0_67 = arith.constant 0 : index
      %105 = vector.load %arg10[%c0_65, %c0_66, %c0_67] : memref<1x32x8xf32, #tpu.memory_space<vmem>>, vector<1x32x8xf32>
      %106 = vector.shape_cast %105 : vector<1x32x8xf32> to vector<32x8xf32>
      %107 = vector.shape_cast %104 : vector<32x8xf32> to vector<1x32x8xf32>
      tpu.vector_store %arg10[%c0_65, %c0_66, %c0_67], %107 {strides = array<i32>} : memref<1x32x8xf32, #tpu.memory_space<vmem>>, vector<1x32x8xf32>,
    } else {
    }
    return
  }
  func.func @transform_0(%arg0: i32, %arg1: i32, %arg2: i32) -> (i32, i32, i32) {
    %c0_i32 = arith.constant 0 : i32
    %c0_i32_0 = arith.constant 0 : i32
    return %arg0, %c0_i32, %arg1 : i32, i32, i32
  }
  func.func @transform_1(%arg0: i32, %arg1: i32, %arg2: i32) -> (i32, i32, i32, i32) {
    %c0_i32 = arith.constant 0 : i32
    %c0_i32_0 = arith.constant 0 : i32
    %c0_i32_1 = arith.constant 0 : i32
    return %arg0, %c0_i32, %arg2, %c0_i32_0 : i32, i32, i32, i32
  }
  func.func @transform_2(%arg0: i32, %arg1: i32, %arg2: i32) -> (i32, i32, i32, i32) {
    %c0_i32 = arith.constant 0 : i32
    %c0_i32_0 = arith.constant 0 : i32
    %c0_i32_1 = arith.constant 0 : i32
    return %arg0, %c0_i32, %c0_i32_0, %arg2 : i32, i32, i32, i32
  }
  func.func @transform_3(%arg0: i32, %arg1: i32, %arg2: i32) -> (i32, i32) {
    %c0_i32 = arith.constant 0 : i32
    %c0_i32_0 = arith.constant 0 : i32
    %c0_i32_1 = arith.constant 0 : i32
    return %c0_i32, %c0_i32_0 : i32, i32
  }
  func.func @transform_4(%arg0: i32, %arg1: i32, %arg2: i32) -> (i32, i32) {
    %c0_i32 = arith.constant 0 : i32
    %c0_i32_0 = arith.constant 0 : i32
    %c0_i32_1 = arith.constant 0 : i32
    return %c0_i32, %c0_i32_0 : i32, i32
  }
  func.func @transform_5(%arg0: i32, %arg1: i32, %arg2: i32) -> (i32, i32) {
    %c0_i32 = arith.constant 0 : i32
    %c0_i32_0 = arith.constant 0 : i32
    %c0_i32_1 = arith.constant 0 : i32
    return %c0_i32, %c0_i32_0 : i32, i32
  }
  func.func @transform_6(%arg0: i32, %arg1: i32, %arg2: i32) -> (i32, i32) {
    %c0_i32 = arith.constant 0 : i32
    %c0_i32_0 = arith.constant 0 : i32
    %c0_i32_1 = arith.constant 0 : i32
    return %c0_i32, %c0_i32_0 : i32, i32
  }
  func.func @transform_7(%arg0: i32, %arg1: i32, %arg2: i32) -> (i32, i32, i32) {
    %c0_i32 = arith.constant 0 : i32
    %c0_i32_0 = arith.constant 0 : i32
    return %arg0, %c0_i32, %arg1 : i32, i32, i32
  }
}

</mosaic_0001>

<bundles_post_ra>
// kernel: tpu_custom_call.1
= control target key start
LH: loop header
LB: loop body
LE: loop exit
PB: predicated region body
PF: predicated region fallthrough
CT: control target
= control target key end

     0   :  { %12 = vsyncpa [#allocation7], 0  ;;  %s1583_s24 = smov 0   ;;  %s1585_s25 = smov 0   ;;  %s1814_s0 = inlined_call_operand.vmem [shape: f32[2,32,8], index: 0, kind: input, shape index: {}]   ;;  %s1815_s1 = inlined_call_operand.vmem [shape: bf16[2,4,8,8], index: 1, kind: input, shape index: {}]   ;;  %s1816_s2 = inlined_call_operand.vmem [shape: bf16[2,4,8,8], index: 2, kind: input, shape index: {}]   ;;  %s1817_s3 = inlined_call_operand.vmem [shape: bf16[32,32], index: 3, kind: input, shape index: {}]   ;;  %s1818_s4 = inlined_call_operand.vmem [shape: bf16[32,32], index: 4, kind: input, shape index: {}]   ;;  %s1819_s5 = inlined_call_operand.hbm [shape: bf16[32,32], index: 5, kind: input, shape index: {}]   ;;  %s1820_s6 = inlined_call_operand.vmem [shape: f32[32,8], index: 6, kind: input, shape index: {}]   ;;  %s1821_s7 = inlined_call_operand.vmem [shape: f32[2,32,8], index: 7, kind: output, shape index: {}]  }
   0x1   :  { %s1587_s26 = smov 0  }
   0x2 LB: > { %s1307_s27 = sadd.s32 4294967295, %s1528_s26   ;;  %s37_s28 = sadd.s32 1, %s1524_s25  ;;  %s1528_s26 = sphi %s1587_s26, %s18_s26   ;;  %s1524_s25 = sphi %s1585_s25, %s1823_s25   ;;  %s1520_s24 = sphi %s1583_s24, %s1822_s24  }
   0x3   : > { %p39_p0 = scmp.ge.s32.totalorder %s37_s28, 2  ;;  %p1309_p1 = scmp.ge.s32.totalorder %s1528_s26, 1 }
   0x4   : > { %p238_p2 = scmp.lt.s32.totalorder %s1528_s26, 3  ;;  %p1382_p4 = scmp.eq.s32.totalorder %s1307_s27, 0 }
   0x5   : > { %s1825_s28 = smov (%p39_p0, %s37_s28), 0  ;;  %s255_s8 = sshll.u32 %s1819_s5, 4  ;;  %s256_s8 = int_to_ptr.hbm [resolvable:$true] %s255_s8 }
   0x6   : > { %p239_p3 = pnand %p1309_p1, %p238_p2  ;;  %s1530_s9 = smov [#allocation6]  }
   0x7   : > { %s257_s10 = sshll.u32 %s1530_s9, 4  ;;  %s1531_s11 = smov 64   ;;  %s258_s10 = int_to_ptr.vmem [resolvable:$true] %s257_s10 }
   0x8   : > { %p1378_p5 = pneg %p239_p3  ;;  %s1532_s12 = smov 4  }
   0x9   : > { %309 = sbr.rel (%p239_p3) target bundleno = 960 (0x3c0), region = 48 }
   0xa   : > { %p1379_p6 = pnand %p1382_p4, %p1378_p5 }
   0xc   : > { %1381 = dma.hbm_to_vmem [thread:$0]  (!%p1379_p6), %s256_s8, 256, %s258_s10, [#allocation7], %s1531_s11, %s1531_s11, %s1532_s12  }
   0xe   : > { %1515 = dma.done.wait (%p1382_p4), [#allocation7], 256  }
   0xf   : > { %1517 = vsyncadd (%p1382_p4), [#allocation7], 4294967040  ;;  %p364_p7 = scmp.lt.s32.totalorder %s1520_s24, 1  ;;  %v1533_v0 = vmov 0   ;;  %v1626_v6 = vld [vmem:[%s1820_s6] sm:$0xff]  ;;  %v1632_v7 = vld [vmem:[%s1820_s6 + $0x10] sm:$0xff] }
  0x10   : > { %1421 = vset.pattern.permute.xlu0 %v1533_v0  ;;  %1422 = vset.pattern.permute.xlu1 %v1533_v0  ;;  %v1366_v9 = vld [vmem:[%s1817_s3] sm:$0xff]  ;;  %vm445_vm0 = vcmask 261120   ;;  %v1643_v10 = vld [vmem:[%s1820_s6 + $0x8] sm:$0xff]  ;;  %v1648_v11 = vld [vmem:[%s1820_s6 + $0x18] sm:$0xff]  ;;  %vm475_vm1 = vcmask 60416   ;;  %vm480_vm2 = vcmask 57344  }
  0x11   : > { %s1827_s24 = smov (!%p364_p7, %s1520_s24), 1  ;;  %417 = vperm.xlu0 %1421, %v1626_v6   ;;  %427 = vperm.xlu1 %1422, %v1632_v7   ;;  %v1367_v12 = vld [vmem:[%s1817_s3 + $0x8] sm:$0xff]  ;;  %vm506_vm3 = vcmask 1043456   ;;  %v1534_v20 = vmov -inf   ;;  %vm489_vm4 = vcmask 64512   ;;  %v1535_v42 = vmov 0.0  }
  0x12   : > { %s1362_s13 = sshll.u32 %s1827_s24, 5  ;;  %s1363_s10 = sshll.u32 %s1827_s24, 4  ;;  %481 = vst.msk [vmem:[#allocation3] sm:$0x1] %vm480_vm2, %v1534_v20 }
  0x13   : > { %s371_s16 = scalar_lea.vmem %s1814_s0, %s1362_s13  ;;  %s1665_s14 = scalar_lea.vmem %s1815_s1, %s1363_s10  ;;  %482 = vst.msk [vmem:[#allocation3 + $0x1] sm:$0x1] %vm480_vm2, %v1534_v20 }
  0x14   : > { %v1613_v1 = vld [vmem:[%s371_s16 + $0x10] sm:$0xff]  ;;  %v1615_v2 = vld [vmem:[%s371_s16 + $0x18] sm:$0xff]  ;;  %v1617_v3 = vld [vmem:[%s371_s16] sm:$0xff]  ;;  %483 = vst.msk [vmem:[#allocation3 + $0x2] sm:$0x1] %vm480_vm2, %v1534_v20  ;;  %s1704_s17 = scalar_lea.vmem %s1816_s2, %s1363_s10  ;;  %s395_s27 = scalar_lea.vmem %s1821_s7, %s1362_s13 }
  0x15   : > { %v406_v4 = vpack.c.bf16 %v1615_v2, %v1613_v1  ;;  %v1621_v5 = vld [vmem:[%s371_s16 + $0x8] sm:$0xff]  ;;  %v494_v25 = vld [vmem:[%s1665_s14] sm:$0xf]  ;;  %484 = vst.msk [vmem:[#allocation3 + $0x3] sm:$0x1] %vm480_vm2, %v1534_v20 }
  0x16   : > { %v405_v8 = vpack.c.bf16 %v1621_v5, %v1617_v3  ;;  %v495_v31 = vld [vmem:[%s1665_s14 + $0x4] sm:$0xf]  ;;  %v496_v38 = vld [vmem:[%s1665_s14 + $0x8] sm:$0xf]  ;;  %v497_v41 = vld [vmem:[%s1665_s14 + $0xc] sm:$0xf] }
  0x17   : > { %458 = vmatpush.bf16.msra.mxu0 %v406_v4  ;;  %485 = vst.msk [vmem:[#allocation4] sm:$0x1] %vm480_vm2, %v1535_v42 }
  0x18   : > { %490 = vst.msk [vmem:[#allocation5] sm:$0xff] %vm489_vm4, %v1535_v42 }
  0x19   : > { %422 = vperm.xlu0 %1421, %v1643_v10   ;;  %432 = vperm.xlu1 %1422, %v1648_v11   ;;  %486 = vst.msk [vmem:[#allocation4 + $0x1] sm:$0x1] %vm480_vm2, %v1535_v42  ;;  %v580_v51 = vld [vmem:[#allocation3] sm:$0x1] }
  0x1a   : > { %487 = vst.msk [vmem:[#allocation4 + $0x2] sm:$0x1] %vm480_vm2, %v1535_v42 }
  0x1b   : > { %459 = vmatpush.bf16.msra.mxu0 %v405_v8  ;;  %488 = vst.msk [vmem:[#allocation4 + $0x3] sm:$0x1] %vm480_vm2, %v1535_v42 }
  0x1c   : > { %491 = vst.msk [vmem:[#allocation5 + $0x8] sm:$0xff] %vm489_vm4, %v1535_v42 }
  0x1d   : > { %492 = vst.msk [vmem:[#allocation5 + $0x10] sm:$0xff] %vm489_vm4, %v1535_v42 }
  0x1e   : > { %1330 = vmatmul.msk.bf16.vlgmr.msra.gmra.mxu0 %vm445_vm0, %v1366_v9  ;;  %493 = vst.msk [vmem:[#allocation5 + $0x18] sm:$0xff] %vm489_vm4, %v1535_v42 }
  0x2e   : > { %1331 = vmatmul.msk.bf16.gmra.mxu0 %vm445_vm0, %v1367_v12 }
  0x83   : > { %v418_v13 = vpop.permute.xlu0 %417  ;;  %v428_v24 = vpop.permute.xlu1 %427 }
  0x8b   : > { %v423_v17 = vpop.permute.xlu0 %422  ;;  %v433_v32 = vpop.permute.xlu1 %432 }
  0x9b   : > { %v461_v14 = vpop.f32.mrf.mxu0 }
  0x9c   : > { %v462_v15 = vadd.f32 %v461_v14, %v418_v13  ;;  %v581_v14 = vld [vmem:[#allocation3 + $0x1] sm:$0x1] }
  0x9e   : > { %v471_v16 = vpack.c.bf16 %v462_v15, %v462_v15 }
  0xa0   : > { %476 = vst.msk [vmem:[#allocation2] sm:$0xf] %vm475_vm1, %v471_v16 }
  0xa3   : > { %v463_v18 = vpop.f32.mrf.mxu0 }
  0xa4   : > { %v464_v19 = vadd.f32 %v463_v18, %v423_v17 }
  0xa6   : > { %v472_v21 = vpack.c.bf16 %v464_v19, %v464_v19 }
  0xa7   : > { %v498_v22 = vld [vmem:[#allocation2] sm:$0xf] }
  0xa8   : > { %477 = vst.msk [vmem:[#allocation2 + $0x4] sm:$0xf] %vm475_vm1, %v472_v21  ;;  %v508_v23 = vsel %vm506_vm3, %v498_v22, 0 }
  0xa9   : > { %517 = vmatpush.bf16.msra.mxu1 %v508_v23 }
  0xab   : > { %v466_v26 = vpop.f32.mrf.mxu0 }
  0xac   : > { %v467_v27 = vadd.f32 %v466_v26, %v428_v24  ;;  %1332 = vmatmul.msk.bf16.vlgmr.msra.gmra.mxu1 %vm489_vm4, %v494_v25 }
  0xae   : > { %v473_v28 = vpack.c.bf16 %v467_v27, %v467_v27 }
  0xaf   : > { %v499_v29 = vld [vmem:[#allocation2 + $0x4] sm:$0xf] }
  0xb0   : > { %478 = vst.msk [vmem:[#allocation2 + $0x8] sm:$0xf] %vm475_vm1, %v473_v28  ;;  %v527_v30 = vsel %vm506_vm3, %v499_v29, 0 }
  0xb1   : > { %536 = vmatpush.bf16.msra.mxu2 %v527_v30 }
  0xb3   : > { %v468_v33 = vpop.f32.mrf.mxu0 }
  0xb4   : > { %v469_v34 = vadd.f32 %v468_v33, %v433_v32  ;;  %1333 = vmatmul.msk.bf16.vlgmr.msra.gmra.mxu2 %vm489_vm4, %v495_v31 }
  0xb6   : > { %v474_v35 = vpack.c.bf16 %v469_v34, %v469_v34 }
  0xb7   : > { %v500_v36 = vld [vmem:[#allocation2 + $0x8] sm:$0xf] }
  0xb8   : > { %479 = vst.msk [vmem:[#allocation2 + $0xc] sm:$0xf] %vm475_vm1, %v474_v35  ;;  %v546_v37 = vsel %vm506_vm3, %v500_v36, 0 }
  0xb9   : > { %555 = vmatpush.bf16.msra.mxu3 %v546_v37  ;;  %v717_v37 = vld [vmem:[%s1704_s17] sm:$0xf] }
  0xbc   : > { %1334 = vmatmul.msk.bf16.vlgmr.msra.gmra.mxu3 %vm489_vm4, %v496_v38  ;;  %v582_v38 = vld [vmem:[#allocation3 + $0x2] sm:$0x1] }
  0xbf   : > { %v501_v39 = vld [vmem:[#allocation2 + $0xc] sm:$0xf] }
  0xc0   : > { %v565_v40 = vsel %vm506_vm3, %v501_v39, 0 }
  0xc1   : > { %574 = vmatpush.bf16.msrb.mxu1 %v565_v40 }
  0xc4   : > { %1335 = vmatmul.msk.bf16.vlgmr.msrb.gmra.mxu1 %vm489_vm4, %v497_v41 }
 0x129   : > { %v519_v43 = vpop.f32.mrf.mxu1 }
 0x12a   : > { %v584_v44 = vsel %vm489_vm4, %v519_v43, -inf }
 0x12b   : > { %v585_v45 = vrot.slane %v584_v44, 4 }
 0x12d   : > { %v586_v46 = vmax.f32 %v584_v44, %v585_v45 }
 0x12f   : > { %v587_v47 = vrot.slane %v586_v46, 2 }
 0x131   : > { %v588_v48 = vmax.f32 %v586_v46, %v587_v47  ;;  %v521_v49 = vpop.f32.mrf.mxu1 }
 0x133   : > { %v589_v50 = vrot.slane %v588_v48, 1 }
 0x135   : > { %v590_v52 = vmax.f32 %v588_v48, %v589_v50  ;;  %v652_v48 = vld [vmem:[#allocation4] sm:$0x1] }
 0x137   : > { %v612_v53 = vmax.f32 %v580_v51, %v590_v52  ;;  %v538_v54 = vpop.f32.mrf.mxu2 }
 0x138   : > { %v591_v55 = vsel %vm489_vm4, %v538_v54, -inf }
 0x139   : > { %v632_v56 = vperm.slane %v612_v53, 0  ;;  %809 = vst.msk [vmem:[#allocation3] sm:$0x1] %vm480_vm2, %v612_v53  ;;  %v592_v57 = vrot.slane %v591_v55, 4  ;;  %v616_v8 = vsub.f32 %v580_v51, %v612_v53 }
 0x13b   : > { %v640_v58 = vsub.f32 %v519_v43, %v632_v56  ;;  %v593_v59 = vmax.f32 %v591_v55, %v592_v57  ;;  %v620_v19 = vmul.f32 1.442695, %v616_v8  ;;  %v583_v43 = vld [vmem:[#allocation3 + $0x3] sm:$0x1] }
 0x13d   : > { %v644_v60 = vmul.f32 1.442695, %v640_v58  ;;  %v594_v61 = vrot.slane %v593_v59, 2 }
 0x13f   : > { %1442 = vpow2.f32 %v644_v60  ;;  %v595_v62 = vmax.f32 %v593_v59, %v594_v61  ;;  %v557_v63 = vpop.f32.mrf.mxu3  ;;  %v540_v0 = vpop.f32.mrf.mxu2 }
 0x140   : > { %v598_v4 = vsel %vm489_vm4, %v557_v63, -inf  ;;  %1444 = vpow2.f32 %v620_v19 }
 0x141   : > { %v596_v9 = vrot.slane %v595_v62, 1  ;;  %v599_v12 = vrot.slane %v598_v4, 4  ;;  %v576_v13 = vpop.f32.mrf.mxu1 }
 0x142   : > { %v605_v15 = vsel %vm489_vm4, %v576_v13, -inf }
 0x143   : > { %v597_v16 = vmax.f32 %v595_v62, %v596_v9  ;;  %v600_v17 = vmax.f32 %v598_v4, %v599_v12  ;;  %v606_v18 = vrot.slane %v605_v15, 4 }
 0x145   : > { %v1443_v20 = vpop.eup %1442  ;;  %v613_v21 = vmax.f32 %v581_v14, %v597_v16  ;;  %v601_v22 = vrot.slane %v600_v17, 2  ;;  %v607_v23 = vmax.f32 %v605_v15, %v606_v18 }
 0x146   : > { %v660_v24 = vsel %vm489_vm4, %v1443_v20, 0.0  ;;  %v721_v25 = vpack.c.bf16 %v1443_v20, %v1443_v20  ;;  %v1710_v47 = vpop.eup %1444 }
 0x147   : > { %v661_v26 = vrot.slane %v660_v24, 4  ;;  %v633_v27 = vperm.slane %v613_v21, 0  ;;  %810 = vst.msk [vmem:[#allocation3 + $0x1] sm:$0x1] %vm480_vm2, %v613_v21  ;;  %v602_v28 = vmax.f32 %v600_v17, %v601_v22  ;;  %v608_v29 = vrot.slane %v607_v23, 2  ;;  %v559_v30 = vpop.f32.mrf.mxu3 }
 0x148   : > { %v729_v31 = vsel %vm506_vm3, %v721_v25, 0  ;;  %v617_v49 = vsub.f32 %v581_v14, %v613_v21  ;;  %v656_v56 = vmul.f32 %v1710_v47, %v652_v48  ;;  %v718_v14 = vld [vmem:[%s1704_s17 + $0x4] sm:$0xf]  ;;  %v653_v22 = vld [vmem:[#allocation4 + $0x1] sm:$0x1] }
 0x149   : > { %v662_v32 = vadd.f32 %v661_v26, %v660_v24  ;;  %v641_v33 = vsub.f32 %v538_v54, %v633_v27  ;;  %v603_v34 = vrot.slane %v602_v28, 1  ;;  %v609_v35 = vmax.f32 %v607_v23, %v608_v29  ;;  %v578_v36 = vpop.f32.mrf.mxu1  ;;  %738 = vmatpush.bf16.msrb.mxu2 %v729_v31  ;;  %v655_v48 = vld [vmem:[#allocation4 + $0x3] sm:$0x1] }
 0x14a   : > { %v622_v57 = vmul.f32 1.442695, %v617_v49 }
 0x14b   : > { %v663_v39 = vrot.slane %v662_v32, 2  ;;  %v646_v40 = vmul.f32 1.442695, %v641_v33  ;;  %v604_v41 = vmax.f32 %v602_v28, %v603_v34  ;;  %v610_v42 = vrot.slane %v609_v35, 1  ;;  %v719_v33 = vld [vmem:[%s1704_s17 + $0x8] sm:$0xf] }
 0x14c   : > { %1336 = vmatmul.msk.bf16.vlgmr.msrb.gmra.mxu2 %vm489_vm4, %v717_v37 }
 0x14d   : > { %v664_v44 = vadd.f32 %v663_v39, %v662_v32  ;;  %1446 = vpow2.f32 %v646_v40  ;;  %v614_v45 = vmax.f32 %v582_v38, %v604_v41  ;;  %v611_v46 = vmax.f32 %v609_v35, %v610_v42 }
 0x14f   : > { %v665_v50 = vrot.slane %v664_v44, 1  ;;  %v634_v51 = vperm.slane %v614_v45, 0  ;;  %811 = vst.msk [vmem:[#allocation3 + $0x2] sm:$0x1] %vm480_vm2, %v614_v45  ;;  %v615_v52 = vmax.f32 %v583_v43, %v611_v46  ;;  %v618_v9 = vsub.f32 %v582_v38, %v614_v45  ;;  %v720_v38 = vld [vmem:[%s1704_s17 + $0xc] sm:$0xf] }
 0x151   : > { %v666_v53 = vadd.f32 %v665_v50, %v664_v44  ;;  %v642_v54 = vsub.f32 %v557_v63, %v634_v51  ;;  %v635_v55 = vperm.slane %v615_v52, 0  ;;  %812 = vst.msk [vmem:[#allocation3 + $0x3] sm:$0x1] %vm480_vm2, %v615_v52  ;;  %v619_v15 = vsub.f32 %v583_v43, %v615_v52  ;;  %v654_v43 = vld [vmem:[#allocation4 + $0x2] sm:$0x1] }
 0x153   : > { %v1447_v58 = vpop.eup %1446  ;;  %v648_v59 = vmul.f32 1.442695, %v642_v54  ;;  %v643_v60 = vsub.f32 %v576_v13, %v635_v55  ;;  %v688_v61 = vadd.f32 %v666_v53, %v656_v56  ;;  %v624_v13 = vmul.f32 1.442695, %v618_v9 }
 0x154   : > { %v667_v62 = vsel %vm489_vm4, %v1447_v58, 0.0  ;;  %v722_v0 = vpack.c.bf16 %v1447_v58, %v1447_v58  ;;  %v626_v23 = vmul.f32 1.442695, %v619_v15  ;;  %v705_v56 = vperm.slane %v1710_v47, 0 }
 0x155   : > { %v668_v4 = vrot.slane %v667_v62, 4  ;;  %1448 = vpow2.f32 %v648_v59  ;;  %v650_v8 = vmul.f32 1.442695, %v643_v60  ;;  %693 = vst.msk [vmem:[#allocation4] sm:$0x1] %vm480_vm2, %v688_v61 }
 0x156   : > { %v748_v63 = vsel %vm506_vm3, %v722_v0, 0  ;;  %1450 = vpow2.f32 %v622_v57  ;;  %v697_v57 = vld [vmem:[#allocation5] sm:$0xff]  ;;  %v698_v0 = vld [vmem:[#allocation5 + $0x8] sm:$0xff] }
 0x157   : > { %v669_v12 = vadd.f32 %v668_v4, %v667_v62  ;;  %1452 = vpow2.f32 %v650_v8  ;;  %757 = vmatpush.bf16.msrb.mxu3 %v748_v63  ;;  %v713_v58 = vmul.f32 %v705_v56, %v697_v57  ;;  %v699_v8 = vld [vmem:[#allocation5 + $0x10] sm:$0xff] }
 0x158   : > { %1454 = vpow2.f32 %v624_v13  ;;  %v700_v13 = vld [vmem:[#allocation5 + $0x18] sm:$0xff] }
 0x159   : > { %v670_v16 = vrot.slane %v669_v12, 2  ;;  %1456 = vpow2.f32 %v626_v23 }
 0x15a   : > { %1337 = vmatmul.msk.bf16.vlgmr.msrb.gmra.mxu3 %vm489_vm4, %v718_v14 }
 0x15b   : > { %v1449_v17 = vpop.eup %1448  ;;  %v671_v18 = vadd.f32 %v670_v16, %v669_v12 }
 0x15c   : > { %v1451_v19 = vpop.eup %1450  ;;  %v674_v20 = vsel %vm489_vm4, %v1449_v17, 0.0  ;;  %v723_v21 = vpack.c.bf16 %v1449_v17, %v1449_v17 }
 0x15d   : > { %v1453_v24 = vpop.eup %1452  ;;  %v672_v25 = vrot.slane %v671_v18, 1  ;;  %v675_v26 = vrot.slane %v674_v20, 4  ;;  %v657_v34 = vmul.f32 %v1451_v19, %v653_v22  ;;  %v706_v62 = vperm.slane %v1451_v19, 0 }
 0x15e   : > { %v681_v27 = vsel %vm489_vm4, %v1453_v24, 0.0  ;;  %v767_v28 = vsel %vm506_vm3, %v723_v21, 0  ;;  %v724_v29 = vpack.c.bf16 %v1453_v24, %v1453_v24  ;;  %v1455_v42 = vpop.eup %1454 }
 0x15f   : > { %v673_v30 = vadd.f32 %v672_v25, %v671_v18  ;;  %v676_v31 = vadd.f32 %v675_v26, %v674_v20  ;;  %v682_v32 = vrot.slane %v681_v27, 4  ;;  %776 = vmatpush.bf16.msra.mxu1 %v767_v28  ;;  %v1457_v46 = vpop.eup %1456  ;;  %v658_v51 = vmul.f32 %v1455_v42, %v654_v43  ;;  %v820_v25 = vld [vmem:[#allocation4] sm:$0x1] }
 0x160   : > { %v786_v35 = vsel %vm506_vm3, %v724_v29, 0  ;;  %v659_v54 = vmul.f32 %v1457_v46, %v655_v48  ;;  %v707_v4 = vperm.slane %v1455_v42, 0  ;;  %v714_v63 = vmul.f32 %v706_v62, %v698_v0 }
 0x161   : > { %v677_v36 = vrot.slane %v676_v31, 2  ;;  %v683_v37 = vadd.f32 %v682_v32, %v681_v27  ;;  %795 = vmatpush.bf16.msra.mxu2 %v786_v35  ;;  %v689_v39 = vadd.f32 %v673_v30, %v657_v34  ;;  %v708_v47 = vperm.slane %v1457_v46, 0 }
 0x162   : > { %1338 = vmatmul.msk.bf16.vlgmr.msra.gmra.mxu1 %vm489_vm4, %v719_v33  ;;  %v715_v14 = vmul.f32 %v707_v4, %v699_v8  ;;  %v1536_v28 = vmov 1   ;;  %v1538_v48 = vmov 3  }
 0x163   : > { %v678_v40 = vadd.f32 %v677_v36, %v676_v31  ;;  %v684_v41 = vrot.slane %v683_v37, 2  ;;  %694 = vst.msk [vmem:[#allocation4 + $0x1] sm:$0x1] %vm480_vm2, %v689_v39  ;;  %v716_v21 = vmul.f32 %v708_v47, %v700_v13  ;;  %1424 = vset.pattern.permute.xlu0 %v1536_v28  ;;  %1423 = vset.pattern.permute.xlu2 %v1536_v28 }
 0x164   : > { %1339 = vmatmul.msk.bf16.vlgmr.msra.gmra.mxu2 %vm489_vm4, %v720_v38  ;;  %866 = vperm.xlu0 %1424, %v1632_v7  }
 0x165   : > { %v679_v44 = vrot.slane %v678_v40, 1  ;;  %v685_v45 = vadd.f32 %v684_v41, %v683_v37  ;;  %1425 = vset.pattern.permute.xlu1 %v1536_v28  ;;  %856 = vperm.xlu2 %1423, %v1626_v6  }
 0x166   : > { %871 = vperm.xlu1 %1425, %v1648_v11  }
 0x167   : > { %v680_v49 = vadd.f32 %v679_v44, %v678_v40  ;;  %v686_v50 = vrot.slane %v685_v45, 1 }
 0x169   : > { %v687_v52 = vadd.f32 %v686_v50, %v685_v45  ;;  %v690_v53 = vadd.f32 %v680_v49, %v658_v51  ;;  %v1537_v45 = vmov 4   ;;  %v1368_v49 = vld [vmem:[%s1818_s4] sm:$0xff]  ;;  %v1369_v50 = vld [vmem:[%s1818_s4 + $0x8] sm:$0xff] }
 0x16a   : > { %v821_v19 = vld [vmem:[#allocation4 + $0x1] sm:$0x1] }
 0x16b   : > { %695 = vst.msk [vmem:[#allocation4 + $0x2] sm:$0x1] %vm480_vm2, %v690_v53  ;;  %v691_v55 = vadd.f32 %v687_v52, %v659_v54 }
 0x16c   : > { %1429 = vset.pattern.permute.xlu0 %v1537_v45 }
 0x16d   : > { %696 = vst.msk [vmem:[#allocation4 + $0x3] sm:$0x1] %vm480_vm2, %v691_v55  ;;  %861 = vperm.xlu2 %1423, %v1643_v10   ;;  %1009 = vperm.xlu0 %1429, %v1648_v11  }
 0x16e   : > { %1427 = vset.pattern.permute.xlu1 %v1538_v48 }
 0x16f   : > { %989 = vperm.xlu1 %1427, %v1648_v11  }
 0x172   : > { %v822_v17 = vld [vmem:[#allocation4 + $0x2] sm:$0x1] }
 0x173   : > { %1458 = vrcp.f32 %v822_v17 }
 0x174   : > { %v823_v18 = vld [vmem:[#allocation4 + $0x3] sm:$0x1] }
 0x175   : > { %1460 = vrcp.f32 %v823_v18  ;;  %1426 = vset.pattern.permute.xlu2 %v1538_v48 }
 0x176   : > { %1462 = vrcp.f32 %v821_v19  ;;  %985 = vperm.xlu2 %1426, %v1632_v7  }
 0x177   : > { %1464 = vrcp.f32 %v820_v25  ;;  %977 = vperm.xlu1 %1427, %v1626_v6  }
 0x179   : > { %v1459_v26 = vpop.eup %1458 }
 0x17a   : > { %v834_v32 = vperm.slane %v1459_v26, 0 }
 0x17b   : > { %v1461_v27 = vpop.eup %1460 }
 0x17c   : > { %v1463_v29 = vpop.eup %1462  ;;  %v835_v33 = vperm.slane %v1461_v27, 0 }
 0x17d   : > { %v1465_v34 = vpop.eup %1464  ;;  %v833_v39 = vperm.slane %v1463_v29, 0 }
 0x17e   : > { %v832_v42 = vperm.slane %v1465_v34, 0  ;;  %1428 = vset.pattern.permute.xlu2 %v1537_v45 }
 0x17f   : > { %1431 = vset.pattern.permute.xlu1 %v1537_v45  ;;  %1005 = vperm.xlu2 %1428, %v1632_v7  }
 0x180   : > { %997 = vperm.xlu1 %1431, %v1626_v6  }
 0x187   : > { %1430 = vset.pattern.permute.xlu2 %v1538_v48 }
 0x188   : > { %981 = vperm.xlu2 %1430, %v1643_v10  }
 0x190   : > { %1432 = vset.pattern.permute.xlu2 %v1537_v45 }
 0x191   : > { %1001 = vperm.xlu2 %1432, %v1643_v10  }
 0x1bf   : > { %v857_v52 = vpop.permute.xlu2 %856 }
 0x1c7   : > { %v862_v54 = vpop.permute.xlu2 %861 }
 0x1cf   : > { %v740_v59 = vpop.f32.mrf.mxu2 }
 0x1d0   : > { %v801_v60 = vadd.f32 %v740_v59, %v713_v58  ;;  %v1539_v58 = vmov 32.0  }
 0x1d1   : > { %1466 = vrcp.f32 %v1539_v58 }
 0x1d2   : > { %805 = vst.msk [vmem:[#allocation5] sm:$0xff] %vm489_vm4, %v801_v60 }
 0x1d6   : > { %v867_v55 = vpop.permute.xlu0 %866 }
 0x1d7   : > { %v742_v61 = vpop.f32.mrf.mxu2  ;;  %v1467_v4 = vpop.eup %1466 }
 0x1d8   : > { %v872_v8 = vpop.permute.xlu1 %871  ;;  %vm936_vm5 = vweird.f32 %v1467_v4 }
 0x1d9   : > { %v816_v40 = vld [vmem:[#allocation5] sm:$0xff] }
 0x1da   : > { %v840_v44 = vmul.f32 %v832_v42, %v816_v40 }
 0x1dd   : > { %v759_v9 = vpop.f32.mrf.mxu3 }
 0x1de   : > { %v802_v12 = vadd.f32 %v759_v9, %v714_v63 }
 0x1df   : > { %v778_v15 = vpop.f32.mrf.mxu1 }
 0x1e0   : > { %806 = vst.msk [vmem:[#allocation5 + $0x8] sm:$0xff] %vm489_vm4, %v802_v12  ;;  %v803_v16 = vadd.f32 %v778_v15, %v715_v14 }
 0x1e2   : > { %807 = vst.msk [vmem:[#allocation5 + $0x10] sm:$0xff] %vm489_vm4, %v803_v16  ;;  %v932_v16 = vmul.f32 32.0, %v1467_v4 }
 0x1e5   : > { %v761_v20 = vpop.f32.mrf.mxu3 }
 0x1e7   : > { %v780_v22 = vpop.f32.mrf.mxu1  ;;  %v797_v23 = vpop.f32.mrf.mxu2  ;;  %v817_v36 = vld [vmem:[#allocation5 + $0x8] sm:$0xff] }
 0x1e8   : > { %v804_v24 = vadd.f32 %v797_v23, %v716_v21  ;;  %v841_v43 = vmul.f32 %v833_v39, %v817_v36 }
 0x1e9   : > { %v818_v31 = vld [vmem:[#allocation5 + $0x10] sm:$0xff] }
 0x1ea   : > { %808 = vst.msk [vmem:[#allocation5 + $0x18] sm:$0xff] %vm489_vm4, %v804_v24  ;;  %v842_v37 = vmul.f32 %v834_v32, %v818_v31  ;;  %v848_v46 = vpack.c.bf16 %v841_v43, %v840_v44 }
 0x1ef   : > { %v799_v30 = vpop.f32.mrf.mxu2 }
 0x1f1   : > { %v819_v35 = vld [vmem:[#allocation5 + $0x18] sm:$0xff] }
 0x1f2   : > { %v843_v38 = vmul.f32 %v835_v33, %v819_v35 }
 0x1f4   : > { %v849_v41 = vpack.c.bf16 %v843_v38, %v842_v37 }
 0x1f6   : > { %897 = vmatpush.bf16.msra.mxu3 %v849_v41 }
 0x1fa   : > { %898 = vmatpush.bf16.msra.mxu3 %v848_v46  ;;  %v986_v46 = vpop.permute.xlu2 %985 }
 0x1fd   : > { %1348 = vmatmul.msk.bf16.vlgmr.msra.gmra.mxu3 %vm445_vm0, %v1368_v49 }
 0x20d   : > { %1349 = vmatmul.msk.bf16.gmra.mxu3 %vm445_vm0, %v1369_v50 }
 0x280   : > { %v900_v51 = vpop.f32.mrf.mxu3 }
 0x281   : > { %v901_v59 = vadd.f32 %v900_v51, %v857_v52  ;;  %v1006_v52 = vpop.permute.xlu2 %1005 }
 0x283   : > { %v914_v62 = vadd.f32 %v901_v59, %v1617_v3  ;;  %v933_v3 = vsub.f32 1.0, %v932_v16 }
 0x285   : > { %v918_v12 = vsel %vm489_vm4, %v914_v62, 0.0  ;;  %v934_v20 = vmul.f32 %v1467_v4, %v933_v3  ;;  %v1542_v3 = vmov 6  }
 0x287   : > { %v935_v22 = vadd.f32 %v1467_v4, %v934_v20 }
 0x288   : > { %v902_v53 = vpop.f32.mrf.mxu3 }
 0x289   : > { %v903_v56 = vadd.f32 %v902_v53, %v862_v54  ;;  %v1764_v25 = vsel %vm936_vm5, %v1467_v4, %v935_v22  ;;  %v1540_v53 = vmov 2   ;;  %v990_v54 = vpop.permute.xlu1 %989  ;;  %v982_v59 = vpop.permute.xlu2 %981 }
 0x28a   : > { %1434 = vset.pattern.permute.xlu1 %v1540_v53  ;;  %1433 = vset.pattern.permute.xlu0 %v1540_v53 }
 0x28b   : > { %v915_v61 = vadd.f32 %v903_v56, %v1621_v5  ;;  %1027 = vperm.xlu1 %1434, %v1643_v10   ;;  %1023 = vperm.xlu0 %1433, %v1626_v6  }
 0x28c   : > { %1435 = vset.pattern.permute.xlu2 %v1540_v53 }
 0x28d   : > { %v919_v63 = vsel %vm489_vm4, %v915_v61, 0.0  ;;  %1031 = vperm.xlu2 %1435, %v1632_v7  }
 0x28e   : > { %v920_v47 = vadd.f32 %v919_v63, %v918_v12 }
 0x290   : > { %v905_v57 = vpop.f32.mrf.mxu3 }
 0x291   : > { %v906_v60 = vadd.f32 %v905_v57, %v867_v55 }
 0x293   : > { %v916_v0 = vadd.f32 %v906_v60, %v1613_v1  ;;  %1035 = vperm.xlu1 %1434, %v1648_v11   ;;  %v1541_v60 = vmov 5  }
 0x294   : > { %1437 = vset.pattern.permute.xlu0 %v1541_v60 }
 0x295   : > { %v921_v14 = vsel %vm489_vm4, %v916_v0, 0.0  ;;  %1133 = vperm.xlu0 %1437, %v1643_v10   ;;  %1436 = vset.pattern.permute.xlu2 %v1541_v60 }
 0x296   : > { %v922_v17 = vadd.f32 %v921_v14, %v920_v47  ;;  %1129 = vperm.xlu2 %1436, %v1626_v6   ;;  %v1010_v14 = vpop.permute.xlu0 %1009 }
 0x298   : > { %v907_v9 = vpop.f32.mrf.mxu3 }
 0x299   : > { %v908_v15 = vadd.f32 %v907_v9, %v872_v8 }
 0x29b   : > { %v917_v13 = vadd.f32 %v908_v15, %v1615_v2  ;;  %1438 = vset.pattern.permute.xlu1 %v1541_v60 }
 0x29c   : > { %1137 = vperm.xlu1 %1438, %v1632_v7  }
 0x29d   : > { %v923_v5 = vsel %vm489_vm4, %v917_v13, 0.0  ;;  %1441 = vset.pattern.permute.xlu0 %v1542_v3 }
 0x29e   : > { %v924_v18 = vadd.f32 %v923_v5, %v922_v17  ;;  %v1002_v17 = vpop.permute.xlu2 %1001  ;;  %1157 = vperm.xlu0 %1441, %v1632_v7   ;;  %1141 = vperm.xlu2 %1436, %v1648_v11  }
 0x2a0   : > { %v925_v1 = vrot.slane %v924_v18, 4 }
 0x2a2   : > { %v926_v21 = vadd.f32 %v925_v1, %v924_v18 }
 0x2a4   : > { %v927_v19 = vrot.slane %v926_v21, 2  ;;  %1439 = vset.pattern.permute.xlu1 %v1542_v3 }
 0x2a5   : > { %1149 = vperm.xlu1 %1439, %v1626_v6  }
 0x2a6   : > { %v928_v23 = vadd.f32 %v927_v19, %v926_v21  ;;  %1440 = vset.pattern.permute.xlu2 %v1542_v3 }
 0x2a7   : > { %1153 = vperm.xlu2 %1440, %v1643_v10  }
 0x2a8   : > { %v929_v24 = vrot.slane %v928_v23, 1 }
 0x2aa   : > { %v930_v26 = vadd.f32 %v929_v24, %v928_v23  ;;  %v1370_v23 = vld [vmem:[#allocation6] sm:$0xff]  ;;  %v1371_v24 = vld [vmem:[#allocation6 + $0x8] sm:$0xff] }
 0x2ac   : > { %v938_v27 = vmul.f32 %v1764_v25, %v930_v26 }
 0x2ad   : > { %1161 = vperm.xlu1 %1439, %v1648_v11  }
 0x2ae   : > { %v942_v28 = vsub.f32 %v917_v13, %v938_v27  ;;  %v939_v2 = vsub.f32 %v914_v62, %v938_v27  ;;  %v940_v29 = vsub.f32 %v915_v61, %v938_v27  ;;  %v941_v30 = vsub.f32 %v916_v0, %v938_v27  ;;  %v978_v62 = vpop.permute.xlu1 %977 }
 0x2b0   : > { %v943_v31 = vmul.f32 %v939_v2, %v939_v2  ;;  %v944_v32 = vmul.f32 %v940_v29, %v940_v29  ;;  %v945_v33 = vmul.f32 %v941_v30, %v941_v30  ;;  %v946_v34 = vmul.f32 %v942_v28, %v942_v28 }
 0x2b2   : > { %v947_v35 = vsel %vm489_vm4, %v943_v31, 0.0  ;;  %v948_v36 = vsel %vm489_vm4, %v944_v32, 0.0  ;;  %v950_v38 = vsel %vm489_vm4, %v945_v33, 0.0  ;;  %v952_v40 = vsel %vm489_vm4, %v946_v34, 0.0 }
 0x2b3   : > { %v949_v37 = vadd.f32 %v948_v36, %v947_v35 }
 0x2b5   : > { %v951_v39 = vadd.f32 %v950_v38, %v949_v37 }
 0x2b6   : > { %v998_v5 = vpop.permute.xlu1 %997 }
 0x2b7   : > { %v953_v41 = vadd.f32 %v952_v40, %v951_v39 }
 0x2b9   : > { %v954_v42 = vrot.slane %v953_v41, 4 }
 0x2bb   : > { %v955_v43 = vadd.f32 %v954_v42, %v953_v41 }
 0x2bd   : > { %v956_v44 = vrot.slane %v955_v43, 2 }
 0x2bf   : > { %v957_v45 = vadd.f32 %v956_v44, %v955_v43 }
 0x2c1   : > { %v958_v48 = vrot.slane %v957_v45, 1 }
 0x2c3   : > { %v959_v49 = vadd.f32 %v958_v48, %v957_v45 }
 0x2c5   : > { %v960_v50 = vmul.f32 %v959_v49, %v1764_v25 }
 0x2c7   : > { %v961_v51 = vadd.f32 1e-05, %v960_v50 }
 0x2c9   : > { %1468 = vrsqrt.f32 %v961_v51  ;;  %vm968_vm7 = vweird.f32 %v961_v51 }
 0x2cf   : > { %v1469_v55 = vpop.eup %1468 }
 0x2d0   : > { %v963_v56 = vmul.f32 %v1469_v55, %v961_v51  ;;  %vm969_vm6 = vweird.f32 %v1469_v55 }
 0x2d1   : > { %vm970_vm8 = vmor %vm968_vm7, %vm969_vm6 }
 0x2d2   : > { %v964_v57 = vmul.f32 %v1469_v55, %v963_v56 }
 0x2d4   : > { %v965_v58 = vmul.f32 0.5, %v964_v57 }
 0x2d6   : > { %v966_v61 = vsub.f32 1.5, %v965_v58 }
 0x2d8   : > { %v967_v0 = vmul.f32 %v1469_v55, %v966_v61 }
 0x2da   : > { %v971_v4 = vsel %vm970_vm8, %v1469_v55, %v967_v0 }
 0x2db   : > { %v974_v8 = vmul.f32 %v971_v4, %v941_v30  ;;  %v975_v63 = vmul.f32 %v971_v4, %v942_v28  ;;  %v973_v9 = vmul.f32 %v971_v4, %v940_v29  ;;  %v972_v12 = vmul.f32 %v971_v4, %v939_v2 }
 0x2dd   : > { %v994_v15 = vmul.f32 %v986_v46, %v974_v8  ;;  %v995_v16 = vmul.f32 %v990_v54, %v975_v63  ;;  %v993_v47 = vmul.f32 %v982_v59, %v973_v9  ;;  %v992_v13 = vmul.f32 %v978_v62, %v972_v12 }
 0x2df   : > { %v1014_v18 = vadd.f32 %v1006_v52, %v994_v15  ;;  %v1015_v1 = vadd.f32 %v1010_v14, %v995_v16  ;;  %v1013_v20 = vadd.f32 %v1002_v17, %v993_v47  ;;  %v1012_v21 = vadd.f32 %v998_v5, %v992_v13 }
 0x2e1   : > { %v1021_v19 = vpack.c.bf16 %v1015_v1, %v1014_v18  ;;  %v1020_v22 = vpack.c.bf16 %v1013_v20, %v1012_v21 }
 0x2e3   : > { %1060 = vmatpush.bf16.msrb.mxu0 %v1021_v19  ;;  %1372 = vmatpush.bf16.msrb.mxu1 %v1021_v19 }
 0x2e7   : > { %1061 = vmatpush.bf16.msrb.mxu0 %v1020_v22  ;;  %1373 = vmatpush.bf16.msrb.mxu1 %v1020_v22  ;;  %v1032_v2 = vpop.permute.xlu2 %1031 }
 0x2ea   : > { %1358 = vmatmul.msk.bf16.vlgmr.msrb.gmra.mxu0 %vm445_vm0, %v1370_v23  ;;  %1359 = vmatmul.msk.bf16.vlgmr.msrb.gmra.mxu1 %vm445_vm0, %v1371_v24 }
 0x2f0   : > { %v1130_v5 = vpop.permute.xlu2 %1129 }
 0x2f8   : > { %v1142_v22 = vpop.permute.xlu2 %1141 }
 0x2fd   : > { %v1028_v7 = vpop.permute.xlu1 %1027  ;;  %v1024_v28 = vpop.permute.xlu0 %1023 }
 0x305   : > { %v1036_v31 = vpop.permute.xlu1 %1035 }
 0x30e   : > { %v1138_v3 = vpop.permute.xlu1 %1137 }
 0x317   : > { %v1150_v23 = vpop.permute.xlu1 %1149 }
 0x367   : > { %v1063_v26 = vpop.f32.mrf.mxu0  ;;  %v1068_v27 = vpop.f32.mrf.mxu1 }
 0x368   : > { %v1064_v29 = vadd.f32 %v1063_v26, %v1024_v28  ;;  %v1069_v30 = vadd.f32 %v1068_v27, %v1032_v2 }
 0x36a   : > { %v1073_v33 = vadd.f32 %v1064_v29, %v1012_v21  ;;  %v1075_v10 = vadd.f32 %v1069_v30, %v1014_v18  ;;  %v1134_v21 = vpop.permute.xlu0 %1133  ;;  %v1154_v29 = vpop.permute.xlu2 %1153 }
 0x36c   : > { %v1077_v37 = vsel %vm489_vm4, %v1073_v33, 0.0  ;;  %v1080_v40 = vsel %vm489_vm4, %v1075_v10, 0.0 }
 0x36f   : > { %v1065_v6 = vpop.f32.mrf.mxu0  ;;  %v1070_v32 = vpop.f32.mrf.mxu1 }
 0x370   : > { %v1066_v34 = vadd.f32 %v1065_v6, %v1028_v7  ;;  %v1071_v35 = vadd.f32 %v1070_v32, %v1036_v31 }
 0x372   : > { %v1074_v36 = vadd.f32 %v1066_v34, %v1013_v20  ;;  %v1076_v11 = vadd.f32 %v1071_v35, %v1015_v1  ;;  %v1162_v34 = vpop.permute.xlu1 %1161 }
 0x374   : > { %v1078_v38 = vsel %vm489_vm4, %v1074_v36, 0.0  ;;  %v1082_v42 = vsel %vm489_vm4, %v1076_v11, 0.0 }
 0x375   : > { %v1079_v39 = vadd.f32 %v1078_v38, %v1077_v37 }
 0x377   : > { %v1081_v41 = vadd.f32 %v1080_v40, %v1079_v39 }
 0x379   : > { %v1083_v43 = vadd.f32 %v1082_v42, %v1081_v41 }
 0x37b   : > { %v1084_v44 = vrot.slane %v1083_v43, 4 }
 0x37d   : > { %v1085_v45 = vadd.f32 %v1084_v44, %v1083_v43 }
 0x37f   : > { %v1086_v46 = vrot.slane %v1085_v45, 2 }
 0x381   : > { %v1087_v48 = vadd.f32 %v1086_v46, %v1085_v45 }
 0x383   : > { %v1088_v49 = vrot.slane %v1087_v48, 1 }
 0x385   : > { %v1089_v50 = vadd.f32 %v1088_v49, %v1087_v48 }
 0x387   : > { %v1090_v51 = vmul.f32 %v1089_v50, %v1764_v25 }
 0x389   : > { %v1092_v52 = vsub.f32 %v1074_v36, %v1090_v51  ;;  %v1093_v53 = vsub.f32 %v1075_v10, %v1090_v51  ;;  %v1094_v54 = vsub.f32 %v1076_v11, %v1090_v51  ;;  %v1091_v55 = vsub.f32 %v1073_v33, %v1090_v51  ;;  %v1158_v33 = vpop.permute.xlu0 %1157 }
 0x38b   : > { %v1095_v56 = vmul.f32 %v1091_v55, %v1091_v55  ;;  %v1096_v57 = vmul.f32 %v1092_v52, %v1092_v52  ;;  %v1097_v58 = vmul.f32 %v1093_v53, %v1093_v53  ;;  %v1098_v59 = vmul.f32 %v1094_v54, %v1094_v54 }
 0x38d   : > { %v1099_v60 = vsel %vm489_vm4, %v1095_v56, 0.0  ;;  %v1100_v61 = vsel %vm489_vm4, %v1096_v57, 0.0  ;;  %v1102_v0 = vsel %vm489_vm4, %v1097_v58, 0.0  ;;  %v1104_v8 = vsel %vm489_vm4, %v1098_v59, 0.0 }
 0x38e   : > { %v1101_v62 = vadd.f32 %v1100_v61, %v1099_v60 }
 0x390   : > { %v1103_v4 = vadd.f32 %v1102_v0, %v1101_v62 }
 0x392   : > { %v1105_v63 = vadd.f32 %v1104_v8, %v1103_v4 }
 0x394   : > { %v1106_v9 = vrot.slane %v1105_v63, 4 }
 0x396   : > { %v1107_v12 = vadd.f32 %v1106_v9, %v1105_v63 }
 0x398   : > { %v1108_v14 = vrot.slane %v1107_v12, 2 }
 0x39a   : > { %v1109_v15 = vadd.f32 %v1108_v14, %v1107_v12 }
 0x39c   : > { %v1110_v16 = vrot.slane %v1109_v15, 1 }
 0x39e   : > { %v1111_v47 = vadd.f32 %v1110_v16, %v1109_v15 }
 0x3a0   : > { %v1112_v13 = vmul.f32 %v1111_v47, %v1764_v25 }
 0x3a2   : > { %v1113_v17 = vadd.f32 1e-05, %v1112_v13 }
 0x3a4   : > { %1470 = vrsqrt.f32 %v1113_v17  ;;  %vm1120_vm10 = vweird.f32 %v1113_v17 }
 0x3aa   : > { %v1471_v18 = vpop.eup %1470 }
 0x3ab   : > { %v1115_v1 = vmul.f32 %v1471_v18, %v1113_v17  ;;  %vm1121_vm9 = vweird.f32 %v1471_v18 }
 0x3ac   : > { %vm1122_vm11 = vmor %vm1120_vm10, %vm1121_vm9 }
 0x3ad   : > { %v1116_v20 = vmul.f32 %v1471_v18, %v1115_v1 }
 0x3af   : > { %v1117_v19 = vmul.f32 0.5, %v1116_v20 }
 0x3b1   : > { %v1118_v24 = vsub.f32 1.5, %v1117_v19 }
 0x3b3   : > { %v1119_v7 = vmul.f32 %v1471_v18, %v1118_v24 }
 0x3b5   : > { %v1123_v26 = vsel %vm1122_vm11, %v1471_v18, %v1119_v7 }
 0x3b6   : > { %v1124_v27 = vmul.f32 %v1123_v26, %v1091_v55  ;;  %v1126_v25 = vmul.f32 %v1123_v26, %v1093_v53  ;;  %v1127_v28 = vmul.f32 %v1123_v26, %v1094_v54  ;;  %v1125_v2 = vmul.f32 %v1123_v26, %v1092_v52 }
 0x3b8   : > { %v1144_v30 = vmul.f32 %v1130_v5, %v1124_v27  ;;  %v1146_v31 = vmul.f32 %v1138_v3, %v1126_v25  ;;  %v1147_v6 = vmul.f32 %v1142_v22, %v1127_v28  ;;  %v1145_v32 = vmul.f32 %v1134_v21, %v1125_v2 }
 0x3ba   : > { %v1164_v35 = vadd.f32 %v1150_v23, %v1144_v30  ;;  %v1165_v10 = vadd.f32 %v1154_v29, %v1145_v32  ;;  %v1167_v36 = vadd.f32 %v1162_v34, %v1147_v6  ;;  %v1166_v37 = vadd.f32 %v1158_v33, %v1146_v31 }
 0x3bc   : > { %1168 = vst.msk [vmem:[%s395_s27] sm:$0xff] %vm489_vm4, %v1164_v35 }
 0x3bd   : > { %1169 = vst.msk [vmem:[%s395_s27 + $0x8] sm:$0xff] %vm489_vm4, %v1165_v10 }
 0x3be   : > { %1171 = vst.msk [vmem:[%s395_s27 + $0x18] sm:$0xff] %vm489_vm4, %v1167_v36 }
 0x3bf   : > { %1170 = vst.msk [vmem:[%s395_s27 + $0x10] sm:$0xff] %vm489_vm4, %v1166_v37 }
 0x3c0 PF: > { %s18_s26 = sadd.s32 1, %s1528_s26   ;;  %s1822_s24 = smov %s1524_s25 }
 0x3c1   : > { %p15_p8 = scmp.ge.s32.totalorder %s18_s26, 4   ;;  %s1823_s25 = smov %s1825_s28 }
 0x3c3   :  { %17 = sbr.rel (!%p15_p8) target bundleno = 2 (0x2), region = 97 }
 0x3c8   :  { %1199 = vsyncpa [#allocation7], 1 }
 0x3c9   :  { %1201 = vsyncpa [#allocation7 + $0x1], 1 }

</bundles_post_ra>
